<compile_context>
chip_gen: v7x
topology: tpu7x:2x2x1
jax: 0.10.0
libtpu: 0.0.40
codegen_flags: <defaults>
</compile_context>

<pallas_src>
import numpy as np
import jax
import jax.numpy as jnp
from jax.experimental import pallas as pl
from jax.experimental.pallas import tpu as pltpu

LAMBDA = 6.0


def _make_kernel(TB, C, D, B_real):
    """One grid step handles TB rows; emits one per-block partial sum."""

    def kernel(xv_ref, g_ref, w_ref, b_ref, y_ref, yhat_ref, out_ref):
        i = pl.program_id(0)

        # Stacked [x ; v_hat] tile (2, TB, D) bf16 -> (2*TB, D); contiguous (free) reshape.
        lhs = xv_ref[...].reshape(2 * TB, D)

        # Single fused MXU pass against W (bf16 in, f32 accumulate): W is pushed once
        # per block instead of twice (logits and u share the same RHS).
        both = jnp.dot(lhs, w_ref[...], preferred_element_type=jnp.float32)  # (2TB, C)
        logits = both[:TB, :] + b_ref[...]           # model logits for the x rows
        u = both[TB:, :]                             # u = v_hat @ W (v_hat unit-norm)

        # softmax of the linear model (f32); exact divide on a (TB,1) column is cheap.
        m = jnp.max(logits, axis=1, keepdims=True)
        e = jnp.exp(logits - m)
        p = e / jnp.sum(e, axis=1, keepdims=True)

        # one-hot labels built in-kernel from int labels
        cls = jax.lax.broadcasted_iota(jnp.int32, (TB, C), 1)
        yoh = (cls == y_ref[...]).astype(jnp.float32)

        # ||grad_x log p_y||_2 = sqrt(r G r^T), r = onehot - p, G = W^T W (Gram trick)
        r = yoh - p
        rg = jnp.dot(r, g_ref[...], preferred_element_type=jnp.float32)      # (TB, C)
        g1 = jnp.sqrt(jnp.maximum(jnp.sum(rg * r, axis=1, keepdims=True), 0.0))

        # v^T H v = (p.u)^2 - sum_c p_c u_c^2   (v already normalized in the wrapper)
        pu_vec = p * u
        pu = jnp.sum(pu_vec, axis=1, keepdims=True)
        puu = jnp.sum(pu_vec * u, axis=1, keepdims=True)
        vhv = pu * pu - puu                                                   # (TB, 1)

        # cross-entropy on the external logits y_hat
        yhat = yhat_ref[...]
        mh = jnp.max(yhat, axis=1, keepdims=True)
        lse = jnp.log(jnp.sum(jnp.exp(yhat - mh), axis=1, keepdims=True)) + mh
        picked = jnp.sum(yoh * yhat, axis=1, keepdims=True)
        ce = lse - picked                                                     # (TB, 1)

        # mask rows added by padding B up to a multiple of 8
        rows = i * TB + jax.lax.broadcasted_iota(jnp.int32, (TB, 1), 0)
        valid = (rows < B_real).astype(jnp.float32)

        row_term = ce + LAMBDA * (g1 + 2.0 * vhv)
        out_ref[...] = jnp.sum(valid * row_term).reshape(1, 1, 1)             # per-block SUM

    return kernel


def _vmem_capacity_bytes():
    try:
        return int(pltpu.get_tpu_info().vmem_capacity_bytes)
    except Exception:
        return 64 << 20   # conservative (v7x per-core); only used for heuristics


def _resident_spec(shape):
    """Constant-index operand: request single buffering when supported."""
    ndim = len(shape)
    idx = lambda i: (0,) * ndim
    if hasattr(pl, "Buffered"):
        try:
            return pl.BlockSpec(shape, idx, pipeline_mode=pl.Buffered(1))
        except Exception:   # older jax without pipeline_mode / Buffered
            pass
    return pl.BlockSpec(shape, idx)


def _pick_batch_tile(Bp, D, vmem_cap):
    """Batch tile (multiple of 8 dividing padded B); budget is generation-aware."""
    # double-buffered stacked (2, TB, D) bf16 tile costs 2 * 2*TB*D*2 = 8*TB*D bytes
    budget = (12 << 20) if vmem_cap >= (100 << 20) else (4 << 20)   # v5e/v6e vs v7x
    cap_rows = max(8, budget // max(1, 8 * D))
    for cand in (1024, 512, 256, 128, 64, 32, 16, 8):
        if cand <= cap_rows and Bp % cand == 0 and (Bp // cand >= 2 or Bp <= 8):
            return cand
    return 8


def _vmem_limit_bytes(TB, D, C, vmem_cap):
    lanes_c = max(128, ((C + 127) // 128) * 128)
    in_tile = 2 * TB * D * 2                       # stacked (2, TB, D) bf16 tile
    est = 2 * in_tile                              # double-buffered x/v stream
    est += 2 * (TB * 128 * 4 + TB * lanes_c * 4)   # labels + y_hat tiles (lane-padded)
    est += 2 * (D * lanes_c * 2 + 8 * lanes_c * 4 + 8 * lanes_c * 4)   # W, G, b
    est += 2 * TB * D * 2                          # safety: lhs copy if reshape materializes
    est += 12 * TB * lanes_c * 4                   # (TB, C)-padded f32 temporaries
    est += 2 << 20                                 # headroom
    if vmem_cap >= (100 << 20):                    # 128 MiB chips (v5e / v6e)
        cap = min(vmem_cap - (16 << 20), 96 << 20)
    else:                                          # 64 MiB per-core (v7x)
        cap = min(vmem_cap // 2, 32 << 20)
    return int(min(max(est, 16 << 20), max(cap, 16 << 20)))


def my_loss(x, y_hat, y_gt, W, b, key):
    """MyLoss forward = CE(y_hat, y_gt) + 6 * DCGLoss(linear_model)(x, y_gt).

    Returns (loss, v_used) where v_used is the (unit-norm, bf16-rounded) random
    direction actually used by the kernel, so a reference can reproduce loss2.
    """
    B = x.shape[0]
    D = int(np.prod(x.shape[1:]))
    C = W.shape[1]

    vmem_cap = _vmem_capacity_bytes()

    Bp = ((B + 7) // 8) * 8                       # pad batch to a multiple of 8
    pad = Bp - B

    x_vec = x.reshape(B, D).astype(jnp.float32)
    yhat = y_hat.astype(jnp.float32)
    y2 = y_gt.reshape(B, 1).astype(jnp.int32)
    if pad:
        x_vec = jnp.pad(x_vec, ((0, pad), (0, 0)))
        yhat = jnp.pad(yhat, ((0, pad), (0, 0)))
        y2 = jnp.pad(y2, ((0, pad), (0, 0)))

    # torch.rand_like semantics: uniform [0,1), normalized in f32 in the wrapper
    # (kernel then needs no (TB, D) normalization pass); bf16 transport.
    v = jax.random.uniform(key, (Bp, D), dtype=jnp.float32)
    vn = v / jnp.linalg.norm(v, axis=-1, keepdims=True)
    vn_bf = vn.astype(jnp.bfloat16)

    xv = jnp.stack([x_vec.astype(jnp.bfloat16), vn_bf], axis=0)   # (2, Bp, D) bf16

    Wf = W.astype(jnp.float32)
    G = jnp.dot(Wf.T, Wf, precision=jax.lax.Precision.HIGHEST)    # (C, C) Gram matrix (f32)
    Wb = Wf.astype(jnp.bfloat16)                                   # MXU operand (bf16)
    b2 = b.reshape(1, C).astype(jnp.float32)

    TB = _pick_batch_tile(Bp, D, vmem_cap)
    nb = Bp // TB
    vmem_limit = _vmem_limit_bytes(TB, D, C, vmem_cap)

    kernel = _make_kernel(TB, C, D, B)

    partials = pl.pallas_call(
        kernel,
        out_shape=jax.ShapeDtypeStruct((nb, 1, 1), jnp.float32),
        grid=(nb,),
        in_specs=[
            pl.BlockSpec((2, TB, D), lambda i: (0, i, 0)),   # stacked x / v tile (pipelined)
            _resident_spec((C, C)),                          # G = W^T W (resident)
            _resident_spec((D, C)),                          # W bf16 (resident)
            _resident_spec((1, C)),                          # bias
            pl.BlockSpec((TB, 1), lambda i: (i, 0)),         # labels
            pl.BlockSpec((TB, C), lambda i: (i, 0)),         # external logits y_hat
        ],
        out_specs=pl.BlockSpec((1, 1, 1), lambda i: (i, 0, 0)),
        compiler_params=pltpu.CompilerParams(
            dimension_semantics=("parallel",),               # per-block partial sums
            vmem_limit_bytes=vmem_limit,
        ),
    )(xv, G, Wb, b2, y2, yhat)

    loss = jnp.sum(partials) / B
    v_used = vn_bf.astype(jnp.float32)[:B]
    return loss, v_used


def reference_loss(x, y_hat, y_gt, W, b, v):
    """Pure-JAX reference mirroring the torch double-autograd semantics."""
    B = x.shape[0]
    xv = x.reshape(B, -1).astype(jnp.float32)

    def logp_sum(xv_):
        logits = xv_ @ W + b
        lp = logits[jnp.arange(B), y_gt] - jax.nn.logsumexp(logits, axis=1)
        return jnp.sum(lp)

    grad1 = jax.grad(logp_sum)(xv)                                   # (B, D)
    loss1 = jnp.mean(jnp.linalg.norm(grad1, axis=1))
    vn = v / jnp.linalg.norm(v, axis=-1, keepdims=True)

    def g1v(xv_):
        return jnp.sum(jax.grad(logp_sum)(xv_) * vn)

    grad2 = jax.grad(g1v)(xv)
    loss2 = jnp.mean(jnp.sum(vn * grad2, axis=1))
    ce = jnp.mean(jax.nn.logsumexp(y_hat, axis=1) - y_hat[jnp.arange(B), y_gt])
    return ce + LAMBDA * (loss1 + 2.0 * loss2)


if __name__ == "__main__":
    key = jax.random.PRNGKey(0)
    k_x, k_yh, k_y, k_w, k_b, k_v = jax.random.split(key, 6)

    B, Cin, H, Wsp = 2, 4, 16, 16
    num_classes = 10
    D = Cin * H * Wsp

    x = jax.random.normal(k_x, (B, Cin, H, Wsp), dtype=jnp.float32)
    y_hat = jax.random.normal(k_yh, (B, num_classes), dtype=jnp.float32)
    y_gt = jax.random.randint(k_y, (B,), 0, num_classes, dtype=jnp.int32)

    # deterministic synthetic "model" parameters (linear classifier D -> num_classes)
    W = 0.02 * jax.random.normal(k_w, (D, num_classes), dtype=jnp.float32)
    bparam = 0.01 * jax.random.normal(k_b, (num_classes,), dtype=jnp.float32)

    loss, v_used = my_loss(x, y_hat, y_gt, W, bparam, k_v)
    loss = jax.block_until_ready(loss)
    v_used = jax.block_until_ready(v_used)

    with jax.default_matmul_precision("highest"):
        ref = jax.block_until_ready(reference_loss(x, y_hat, y_gt, W, bparam, v_used))

    assert np.isfinite(float(loss)), float(loss)
    assert abs(float(loss) - float(ref)) <= 1e-2 * (1.0 + abs(float(ref))), (
        float(loss), float(ref))
    print("KERNEL_OK")
</pallas_src>

<mosaic_0001>
module attributes {stable_mosaic.version = 11 : i64} {
  func.func @kernel(%arg0: i32, %arg1: memref<2x8x1024xbf16, #tpu.memory_space<vmem>>, %arg2: memref<10x10xf32, #tpu.memory_space<vmem>>, %arg3: memref<1024x10xbf16, #tpu.memory_space<vmem>>, %arg4: memref<1x10xf32, #tpu.memory_space<vmem>>, %arg5: memref<8x1xi32, #tpu.memory_space<vmem>>, %arg6: memref<8x10xf32, #tpu.memory_space<vmem>>, %arg7: memref<1x1x1xf32, #tpu.memory_space<vmem>>) attributes {dimension_semantics = [#tpu.dimension_semantics<parallel>], iteration_bounds = array<i64: 1>, scalar_prefetch = 0 : i64, scratch_operands = 0 : i64, tpu.core_type = #tpu.core_type<tc>, window_params = [{transform_indices = @transform_0, window_bounds = array<i64: 2, 8, 1024>}, {pipeline_mode = #tpu.pipeline_mode<synchronous>, transform_indices = @transform_1, window_bounds = array<i64: 10, 10>}, {pipeline_mode = #tpu.pipeline_mode<synchronous>, transform_indices = @transform_2, window_bounds = array<i64: 1024, 10>}, {pipeline_mode = #tpu.pipeline_mode<synchronous>, transform_indices = @transform_3, window_bounds = array<i64: 1, 10>}, {transform_indices = @transform_4, window_bounds = array<i64: 8, 1>}, {transform_indices = @transform_5, window_bounds = array<i64: 8, 10>}, {transform_indices = @transform_6, window_bounds = array<i64: 1, 1, 1>}]} {
    %c0 = arith.constant 0 : index
    %c0_0 = arith.constant 0 : index
    %c0_1 = arith.constant 0 : index
    %0 = vector.load %arg1[%c0, %c0_0, %c0_1] : memref<2x8x1024xbf16, #tpu.memory_space<vmem>>, vector<2x8x1024xbf16>
    %1 = vector.shape_cast %0 : vector<2x8x1024xbf16> to vector<16x1024xbf16>
    %c0_2 = arith.constant 0 : index
    %c0_3 = arith.constant 0 : index
    %2 = vector.load %arg3[%c0_2, %c0_3] : memref<1024x10xbf16, #tpu.memory_space<vmem>>, vector<1024x10xbf16>
    %cst = arith.constant dense<0.000000e+00> : vector<16x10xf32>
    %3 = tpu.matmul %1, %2, %cst {dimension_numbers = #tpu.dot_dimension_numbers<[1], [0], [0], [1], [0, 0, 1, 1], [], []>} : vector<16x1024xbf16>, vector<1024x10xbf16>, vector<16x10xf32> -> vector<16x10xf32>
    %4 = vector.extract_strided_slice %3 {offsets = [0, 0], sizes = [8, 10], strides = [1, 1]} : vector<16x10xf32> to vector<8x10xf32>
    %c0_4 = arith.constant 0 : index
    %c0_5 = arith.constant 0 : index
    %5 = vector.load %arg4[%c0_4, %c0_5] : memref<1x10xf32, #tpu.memory_space<vmem>>, vector<1x10xf32>
    %6 = vector.broadcast %5 : vector<1x10xf32> to vector<8x10xf32>
    %7 = arith.addf %4, %6 : vector<8x10xf32>
    %8 = vector.extract_strided_slice %3 {offsets = [8, 0], sizes = [8, 10], strides = [1, 1]} : vector<16x10xf32> to vector<8x10xf32>
    %cst_6 = arith.constant dense<0xFF800000> : vector<8xf32>
    %9 = vector.multi_reduction <maximumf>, %7, %cst_6 [1] : vector<8x10xf32> to vector<8xf32>
    %10 = vector.shape_cast %9 : vector<8xf32> to vector<8x1xf32>
    %11 = vector.broadcast %10 : vector<8x1xf32> to vector<8x10xf32>
    %12 = arith.subf %7, %11 : vector<8x10xf32>
    %13 = math.exp %12 : vector<8x10xf32>
    %cst_7 = arith.constant dense<0.000000e+00> : vector<8xf32>
    %14 = vector.multi_reduction <add>, %13, %cst_7 [1] : vector<8x10xf32> to vector<8xf32>
    %15 = vector.shape_cast %14 : vector<8xf32> to vector<8x1xf32>
    %16 = vector.broadcast %15 : vector<8x1xf32> to vector<8x10xf32>
    %17 = arith.divf %13, %16 : vector<8x10xf32>
    %18 = tpu.iota {dimensions = array<i32: 1>} : vector<8x10xi32>
    %c0_8 = arith.constant 0 : index
    %c0_9 = arith.constant 0 : index
    %19 = vector.load %arg5[%c0_8, %c0_9] : memref<8x1xi32, #tpu.memory_space<vmem>>, vector<8x1xi32>
    %20 = vector.broadcast %19 : vector<8x1xi32> to vector<8x10xi32>
    %21 = arith.cmpi eq, %18, %20 : vector<8x10xi32>
    %22 = arith.extui %21 : vector<8x10xi1> to vector<8x10xi32>
    %23 = arith.sitofp %22 : vector<8x10xi32> to vector<8x10xf32>
    %24 = arith.subf %23, %17 : vector<8x10xf32>
    %c0_10 = arith.constant 0 : index
    %c0_11 = arith.constant 0 : index
    %25 = vector.load %arg2[%c0_10, %c0_11] : memref<10x10xf32, #tpu.memory_space<vmem>>, vector<10x10xf32>
    %cst_12 = arith.constant dense<0.000000e+00> : vector<8x10xf32>
    %26 = tpu.matmul %24, %25, %cst_12 {dimension_numbers = #tpu.dot_dimension_numbers<[1], [0], [0], [1], [0, 0, 1, 1], [], []>} : vector<8x10xf32>, vector<10x10xf32>, vector<8x10xf32> -> vector<8x10xf32>
    %27 = arith.mulf %26, %24 : vector<8x10xf32>
    %cst_13 = arith.constant dense<0.000000e+00> : vector<8xf32>
    %28 = vector.multi_reduction <add>, %27, %cst_13 [1] : vector<8x10xf32> to vector<8xf32>
    %29 = vector.shape_cast %28 : vector<8xf32> to vector<8x1xf32>
    %cst_14 = arith.constant 0.000000e+00 : f32
    %30 = vector.broadcast %cst_14 : f32 to vector<8x1xf32>
    %31 = arith.maximumf %29, %30 : vector<8x1xf32>
    %32 = math.sqrt %31 : vector<8x1xf32>
    %33 = arith.mulf %17, %8 : vector<8x10xf32>
    %cst_15 = arith.constant dense<0.000000e+00> : vector<8xf32>
    %34 = vector.multi_reduction <add>, %33, %cst_15 [1] : vector<8x10xf32> to vector<8xf32>
    %35 = vector.shape_cast %34 : vector<8xf32> to vector<8x1xf32>
    %36 = arith.mulf %33, %8 : vector<8x10xf32>
    %cst_16 = arith.constant dense<0.000000e+00> : vector<8xf32>
    %37 = vector.multi_reduction <add>, %36, %cst_16 [1] : vector<8x10xf32> to vector<8xf32>
    %38 = vector.shape_cast %37 : vector<8xf32> to vector<8x1xf32>
    %39 = arith.mulf %35, %35 : vector<8x1xf32>
    %40 = arith.subf %39, %38 : vector<8x1xf32>
    %c0_17 = arith.constant 0 : index
    %c0_18 = arith.constant 0 : index
    %41 = vector.load %arg6[%c0_17, %c0_18] : memref<8x10xf32, #tpu.memory_space<vmem>>, vector<8x10xf32>
    %cst_19 = arith.constant dense<0xFF800000> : vector<8xf32>
    %42 = vector.multi_reduction <maximumf>, %41, %cst_19 [1] : vector<8x10xf32> to vector<8xf32>
    %43 = vector.shape_cast %42 : vector<8xf32> to vector<8x1xf32>
    %44 = vector.broadcast %43 : vector<8x1xf32> to vector<8x10xf32>
    %45 = arith.subf %41, %44 : vector<8x10xf32>
    %46 = math.exp %45 : vector<8x10xf32>
    %cst_20 = arith.constant dense<0.000000e+00> : vector<8xf32>
    %47 = vector.multi_reduction <add>, %46, %cst_20 [1] : vector<8x10xf32> to vector<8xf32>
    %48 = vector.shape_cast %47 : vector<8xf32> to vector<8x1xf32>
    %49 = math.log %48 : vector<8x1xf32>
    %50 = arith.addf %49, %43 : vector<8x1xf32>
    %51 = arith.mulf %23, %41 : vector<8x10xf32>
    %cst_21 = arith.constant dense<0.000000e+00> : vector<8xf32>
    %52 = vector.multi_reduction <add>, %51, %cst_21 [1] : vector<8x10xf32> to vector<8xf32>
    %53 = vector.shape_cast %52 : vector<8xf32> to vector<8x1xf32>
    %54 = arith.subf %50, %53 : vector<8x1xf32>
    %c8_i32 = arith.constant 8 : i32
    %55 = arith.muli %arg0, %c8_i32 : i32
    %56 = tpu.iota {dimensions = array<i32: 0>} : vector<8x1xi32>
    %57 = vector.broadcast %55 : i32 to vector<8x1xi32>
    %58 = arith.addi %57, %56 : vector<8x1xi32>
    %c2_i32 = arith.constant 2 : i32
    %59 = vector.broadcast %c2_i32 : i32 to vector<8x1xi32>
    %60 = arith.cmpi slt, %58, %59 : vector<8x1xi32>
    %61 = arith.extui %60 : vector<8x1xi1> to vector<8x1xi32>
    %62 = arith.sitofp %61 : vector<8x1xi32> to vector<8x1xf32>
    %cst_22 = arith.constant 2.000000e+00 : f32
    %63 = vector.broadcast %cst_22 : f32 to vector<8x1xf32>
    %64 = arith.mulf %63, %40 : vector<8x1xf32>
    %65 = arith.addf %32, %64 : vector<8x1xf32>
    %cst_23 = arith.constant 6.000000e+00 : f32
    %66 = vector.broadcast %cst_23 : f32 to vector<8x1xf32>
    %67 = arith.mulf %66, %65 : vector<8x1xf32>
    %68 = arith.addf %54, %67 : vector<8x1xf32>
    %69 = arith.mulf %62, %68 : vector<8x1xf32>
    %70 = vector.shape_cast %69 : vector<8x1xf32> to vector<1x8x1xf32>
    %cst_24 = arith.constant dense<0.000000e+00> : vector<1xf32>
    %71 = vector.multi_reduction <add>, %70, %cst_24 [1, 2] : vector<1x8x1xf32> to vector<1xf32>
    %72 = vector.shape_cast %71 : vector<1xf32> to vector<1x1x1xf32>
    %73 = vector.extract %72[0, 0, 0] : f32 from vector<1x1x1xf32>
    %74 = vector.broadcast %73 : f32 to vector<1x1x1xf32>
    %c0_25 = arith.constant 0 : index
    %c0_26 = arith.constant 0 : index
    %c0_27 = arith.constant 0 : index
    %75 = vector.load %arg7[%c0_25, %c0_26, %c0_27] : memref<1x1x1xf32, #tpu.memory_space<vmem>>, vector<1x1x1xf32>
    tpu.vector_store %arg7[%c0_25, %c0_26, %c0_27], %74 {strides = array<i32>} : memref<1x1x1xf32, #tpu.memory_space<vmem>>, vector<1x1x1xf32>,
    return
  }
  func.func @transform_0(%arg0: i32) -> (i32, i32, i32) {
    %c0_i32 = arith.constant 0 : i32
    %c0_i32_0 = arith.constant 0 : i32
    %c0_i32_1 = arith.constant 0 : i32
    return %c0_i32, %arg0, %c0_i32_0 : i32, i32, i32
  }
  func.func @transform_1(%arg0: i32) -> (i32, i32) {
    %c0_i32 = arith.constant 0 : i32
    %c0_i32_0 = arith.constant 0 : i32
    %c0_i32_1 = arith.constant 0 : i32
    return %c0_i32, %c0_i32_0 : i32, i32
  }
  func.func @transform_2(%arg0: i32) -> (i32, i32) {
    %c0_i32 = arith.constant 0 : i32
    %c0_i32_0 = arith.constant 0 : i32
    %c0_i32_1 = arith.constant 0 : i32
    return %c0_i32, %c0_i32_0 : i32, i32
  }
  func.func @transform_3(%arg0: i32) -> (i32, i32) {
    %c0_i32 = arith.constant 0 : i32
    %c0_i32_0 = arith.constant 0 : i32
    %c0_i32_1 = arith.constant 0 : i32
    return %c0_i32, %c0_i32_0 : i32, i32
  }
  func.func @transform_4(%arg0: i32) -> (i32, i32) {
    %c0_i32 = arith.constant 0 : i32
    %c0_i32_0 = arith.constant 0 : i32
    return %arg0, %c0_i32 : i32, i32
  }
  func.func @transform_5(%arg0: i32) -> (i32, i32) {
    %c0_i32 = arith.constant 0 : i32
    %c0_i32_0 = arith.constant 0 : i32
    return %arg0, %c0_i32 : i32, i32
  }
  func.func @transform_6(%arg0: i32) -> (i32, i32, i32) {
    %c0_i32 = arith.constant 0 : i32
    %c0_i32_0 = arith.constant 0 : i32
    %c0_i32_1 = arith.constant 0 : i32
    return %arg0, %c0_i32, %c0_i32_0 : i32, i32, i32
  }
}

</mosaic_0001>

<bundles_post_ra>
// kernel: tpu_custom_call.1
= control target key start
LH: loop header
LB: loop body
LE: loop exit
PB: predicated region body
PF: predicated region fallthrough
CT: control target
= control target key end

     0   :  { %s1522_s0 = inlined_call_operand.vmem [shape: bf16[2,8,1024], index: 0, kind: input, shape index: {}]   ;;  %s1523_s1 = inlined_call_operand.vmem [shape: f32[10,10], index: 1, kind: input, shape index: {}]   ;;  %s1524_s2 = inlined_call_operand.vmem [shape: bf16[1024,10], index: 2, kind: input, shape index: {}]   ;;  %s1525_s3 = inlined_call_operand.vmem [shape: f32[1,10], index: 3, kind: input, shape index: {}]   ;;  %s1526_s4 = inlined_call_operand.vmem [shape: s32[8,1], index: 4, kind: input, shape index: {}]   ;;  %s1527_s5 = inlined_call_operand.vmem [shape: f32[8,10], index: 5, kind: input, shape index: {}]   ;;  %s1528_s6 = inlined_call_operand.hbm [shape: f32[1,1,1], index: 6, kind: output, shape index: {}]  }
   0x1   :  { %v1128_v0 = vld [vmem:[%s1524_s2 + $0x40] sm:$0xff]   ;;  %v1132_v4 = vld [vmem:[%s1524_s2 + $0x48] sm:$0xff]   ;;  %v1136_v8 = vld [vmem:[%s1524_s2 + $0x50] sm:$0xff]  }
   0x2   :  { %v1129_v1 = vld [vmem:[%s1524_s2 + $0xc0] sm:$0xff]   ;;  %1016 = vmatprep.subr.bf16.mxu0 %v1128_v0  ;;  %v1133_v5 = vld [vmem:[%s1524_s2 + $0xc8] sm:$0xff]   ;;  %v1137_v9 = vld [vmem:[%s1524_s2 + $0xd0] sm:$0xff]  }
   0x3   :  { %v1130_v2 = vld [vmem:[%s1524_s2] sm:$0xff]   ;;  %1038 = vmatprep.subr.bf16.mxu1 %v1129_v1  ;;  %v1134_v6 = vld [vmem:[%s1524_s2 + $0x8] sm:$0xff]   ;;  %v1138_v10 = vld [vmem:[%s1524_s2 + $0x10] sm:$0xff]  }
   0x4   :  { %v1131_v3 = vld [vmem:[%s1524_s2 + $0x80] sm:$0xff]   ;;  %1017 = vmatpush3.bf16.msra.mxu0 %v1130_v2  ;;  %v1135_v7 = vld [vmem:[%s1524_s2 + $0x88] sm:$0xff]   ;;  %v1139_v11 = vld [vmem:[%s1524_s2 + $0x90] sm:$0xff]  }
   0x5   :  { %1039 = vmatpush3.bf16.msra.mxu1 %v1131_v3  ;;  %1018 = vmatprep.subr.bf16.mxu0 %v1132_v4  ;;  %v1140_v12 = vld [vmem:[%s1524_s2 + $0x58] sm:$0xff]   ;;  %v1144_v16 = vld [vmem:[%s1524_s2 + $0x60] sm:$0xff]   ;;  %v1148_v20 = vld [vmem:[%s1524_s2 + $0x68] sm:$0xff]  }
   0x6   :  { %1040 = vmatprep.subr.bf16.mxu1 %v1133_v5  ;;  %v1141_v13 = vld [vmem:[%s1524_s2 + $0xd8] sm:$0xff]   ;;  %v1145_v17 = vld [vmem:[%s1524_s2 + $0xe0] sm:$0xff]   ;;  %v1149_v21 = vld [vmem:[%s1524_s2 + $0xe8] sm:$0xff]  }
   0x7   :  { %v1142_v14 = vld [vmem:[%s1524_s2 + $0x18] sm:$0xff]   ;;  %v1146_v18 = vld [vmem:[%s1524_s2 + $0x20] sm:$0xff]   ;;  %v1150_v22 = vld [vmem:[%s1524_s2 + $0x28] sm:$0xff]  }
   0x8   :  { %1019 = vmatpush3.bf16.msra.mxu0 %v1134_v6  ;;  %v1143_v15 = vld [vmem:[%s1524_s2 + $0x98] sm:$0xff]   ;;  %v1147_v19 = vld [vmem:[%s1524_s2 + $0xa0] sm:$0xff]   ;;  %v1151_v23 = vld [vmem:[%s1524_s2 + $0xa8] sm:$0xff]  }
   0x9   :  { %1041 = vmatpush3.bf16.msra.mxu1 %v1135_v7  ;;  %1020 = vmatprep.subr.bf16.mxu0 %v1136_v8  ;;  %v1152_v24 = vld [vmem:[%s1524_s2 + $0x70] sm:$0xff]   ;;  %v1156_v28 = vld [vmem:[%s1524_s2 + $0x78] sm:$0xff]   ;;  %v25_v32 = vld [vmem:[%s1522_s0] sm:$0xff] }
   0xa   :  { %1042 = vmatprep.subr.bf16.mxu1 %v1137_v9  ;;  %v1153_v25 = vld [vmem:[%s1524_s2 + $0xf0] sm:$0xff]   ;;  %v1157_v29 = vld [vmem:[%s1524_s2 + $0xf8] sm:$0xff]   ;;  %v29_v33 = vld [vmem:[%s1522_s0 + $0x20] sm:$0xff] }
   0xb   :  { %v1154_v26 = vld [vmem:[%s1524_s2 + $0x30] sm:$0xff]   ;;  %v1158_v30 = vld [vmem:[%s1524_s2 + $0x38] sm:$0xff]   ;;  %v26_v34 = vld [vmem:[%s1522_s0 + $0x8] sm:$0xff]  ;;  %v939_v35 = vcombine.low %v25_v32, %v29_v33  ;;  %v940_v36 = vcombine.high %v25_v32, %v29_v33 }
   0xc   :  { %1021 = vmatpush3.bf16.msra.mxu0 %v1138_v10  ;;  %v1155_v27 = vld [vmem:[%s1524_s2 + $0xb0] sm:$0xff]   ;;  %v1159_v31 = vld [vmem:[%s1524_s2 + $0xb8] sm:$0xff]   ;;  %v30_v37 = vld [vmem:[%s1522_s0 + $0x28] sm:$0xff] }
   0xd   :  { %1043 = vmatpush3.bf16.msra.mxu1 %v1139_v11  ;;  %1022 = vmatprep.subr.bf16.mxu0 %v1140_v12  ;;  %v941_v38 = vcombine.low %v26_v34, %v30_v37  ;;  %v942_v39 = vcombine.high %v26_v34, %v30_v37  ;;  %v1160_v40 = vld [vmem:[%s1524_s2 + $0x140] sm:$0xff]   ;;  %v1164_v44 = vld [vmem:[%s1524_s2 + $0x148] sm:$0xff]   ;;  %v1168_v48 = vld [vmem:[%s1524_s2 + $0x150] sm:$0xff]  }
   0xe   :  { %1044 = vmatprep.subr.bf16.mxu1 %v1141_v13  ;;  %617 = vmatprep.mubr.bf16.mxu0 %v940_v36  ;;  %v1161_v41 = vld [vmem:[%s1524_s2 + $0x1c0] sm:$0xff]   ;;  %v1165_v45 = vld [vmem:[%s1524_s2 + $0x1c8] sm:$0xff]   ;;  %v1169_v49 = vld [vmem:[%s1524_s2 + $0x1d0] sm:$0xff]  }
   0xf   :  { %658 = vmatprep.mubr.bf16.mxu1 %v942_v39  ;;  %v1162_v42 = vld [vmem:[%s1524_s2 + $0x100] sm:$0xff]   ;;  %v1166_v46 = vld [vmem:[%s1524_s2 + $0x108] sm:$0xff]   ;;  %v1170_v50 = vld [vmem:[%s1524_s2 + $0x110] sm:$0xff]  }
  0x10   :  { %1023 = vmatpush3.bf16.msra.mxu0 %v1142_v14  ;;  %v1163_v43 = vld [vmem:[%s1524_s2 + $0x180] sm:$0xff]   ;;  %v1167_v47 = vld [vmem:[%s1524_s2 + $0x188] sm:$0xff]   ;;  %v1171_v51 = vld [vmem:[%s1524_s2 + $0x190] sm:$0xff]  }
  0x11   :  { %1045 = vmatpush3.bf16.msra.mxu1 %v1143_v15  ;;  %1024 = vmatprep.subr.bf16.mxu0 %v1144_v16  ;;  %v1172_v52 = vld [vmem:[%s1524_s2 + $0x158] sm:$0xff]   ;;  %v1176_v56 = vld [vmem:[%s1524_s2 + $0x160] sm:$0xff]   ;;  %v1180_v60 = vld [vmem:[%s1524_s2 + $0x168] sm:$0xff]  }
  0x12   :  { %1046 = vmatprep.subr.bf16.mxu1 %v1145_v17  ;;  %v1173_v53 = vld [vmem:[%s1524_s2 + $0x1d8] sm:$0xff]   ;;  %v1177_v57 = vld [vmem:[%s1524_s2 + $0x1e0] sm:$0xff]   ;;  %v1181_v61 = vld [vmem:[%s1524_s2 + $0x1e8] sm:$0xff]  }
  0x13   :  { %v1174_v54 = vld [vmem:[%s1524_s2 + $0x118] sm:$0xff]   ;;  %v1178_v58 = vld [vmem:[%s1524_s2 + $0x120] sm:$0xff]   ;;  %v1182_v62 = vld [vmem:[%s1524_s2 + $0x128] sm:$0xff]  }
  0x14   :  { %1025 = vmatpush3.bf16.msra.mxu0 %v1146_v18  ;;  %v1175_v55 = vld [vmem:[%s1524_s2 + $0x198] sm:$0xff]   ;;  %v1179_v59 = vld [vmem:[%s1524_s2 + $0x1a0] sm:$0xff]   ;;  %v1183_v63 = vld [vmem:[%s1524_s2 + $0x1a8] sm:$0xff]  }
  0x15   :  { %1047 = vmatpush3.bf16.msra.mxu1 %v1147_v19  ;;  %1026 = vmatprep.subr.bf16.mxu0 %v1148_v20  ;;  %v1184_v0 = vld [vmem:[%s1524_s2 + $0x170] sm:$0xff]   ;;  %v1188_v4 = vld [vmem:[%s1524_s2 + $0x178] sm:$0xff]  }
  0x16   :  { %1048 = vmatprep.subr.bf16.mxu1 %v1149_v21  ;;  %v1185_v1 = vld [vmem:[%s1524_s2 + $0x1f0] sm:$0xff]   ;;  %v1189_v5 = vld [vmem:[%s1524_s2 + $0x1f8] sm:$0xff]  }
  0x17   :  { %v1186_v2 = vld [vmem:[%s1524_s2 + $0x130] sm:$0xff]   ;;  %v1190_v6 = vld [vmem:[%s1524_s2 + $0x138] sm:$0xff]  }
  0x18   :  { %1027 = vmatpush3.bf16.msra.mxu0 %v1150_v22  ;;  %v1187_v3 = vld [vmem:[%s1524_s2 + $0x1b0] sm:$0xff]   ;;  %v1191_v7 = vld [vmem:[%s1524_s2 + $0x1b8] sm:$0xff]  }
  0x19   :  { %1049 = vmatpush3.bf16.msra.mxu1 %v1151_v23  ;;  %1028 = vmatprep.subr.bf16.mxu0 %v1152_v24  ;;  %v27_v8 = vld [vmem:[%s1522_s0 + $0x10] sm:$0xff]  ;;  %v28_v12 = vld [vmem:[%s1522_s0 + $0x18] sm:$0xff] }
  0x1a   :  { %1050 = vmatprep.subr.bf16.mxu1 %v1153_v25  ;;  %v31_v9 = vld [vmem:[%s1522_s0 + $0x30] sm:$0xff]  ;;  %v32_v13 = vld [vmem:[%s1522_s0 + $0x38] sm:$0xff] }
  0x1b   :  { %v943_v10 = vcombine.low %v27_v8, %v31_v9  ;;  %v944_v11 = vcombine.high %v27_v8, %v31_v9 }
  0x1c   :  { %1029 = vmatpush3.bf16.msra.mxu0 %v1154_v26 }
  0x1d   :  { %1051 = vmatpush3.bf16.msra.mxu1 %v1155_v27  ;;  %1030 = vmatprep.subr.bf16.mxu0 %v1156_v28 }
  0x1e   :  { %1052 = vmatprep.subr.bf16.mxu1 %v1157_v29 }
  0x20   :  { %1031 = vmatpush3.bf16.msra.mxu0 %v1158_v30 }
  0x21   :  { %1053 = vmatpush3.bf16.msra.mxu1 %v1159_v31  ;;  %1060 = vmatprep.subr.bf16.mxu0 %v1160_v40 }
  0x22   :  { %1082 = vmatprep.subr.bf16.mxu1 %v1161_v41 }
  0x23   :  { %618 = vmatmul.mubr.bf16.vlgmr.msra.gmra.mrb[0].mxu0 %v939_v35 }
  0x24   :  { %659 = vmatmul.mubr.bf16.vlgmr.msra.gmra.mrb[0].mxu1 %v941_v38  ;;  %1061 = vmatpush3.bf16.msra.mxu0 %v1162_v42 }
  0x25   :  { %1083 = vmatpush3.bf16.msra.mxu1 %v1163_v43  ;;  %1062 = vmatprep.subr.bf16.mxu0 %v1164_v44 }
  0x26   :  { %1084 = vmatprep.subr.bf16.mxu1 %v1165_v45 }
  0x28   :  { %1063 = vmatpush3.bf16.msra.mxu0 %v1166_v46 }
  0x29   :  { %1085 = vmatpush3.bf16.msra.mxu1 %v1167_v47  ;;  %1064 = vmatprep.subr.bf16.mxu0 %v1168_v48 }
  0x2a   :  { %1086 = vmatprep.subr.bf16.mxu1 %v1169_v49 }
  0x2c   :  { %1065 = vmatpush3.bf16.msra.mxu0 %v1170_v50 }
  0x2d   :  { %1087 = vmatpush3.bf16.msra.mxu1 %v1171_v51  ;;  %1066 = vmatprep.subr.bf16.mxu0 %v1172_v52 }
  0x2e   :  { %1088 = vmatprep.subr.bf16.mxu1 %v1173_v53 }
  0x30   :  { %1067 = vmatpush3.bf16.msra.mxu0 %v1174_v54 }
  0x31   :  { %1089 = vmatpush3.bf16.msra.mxu1 %v1175_v55  ;;  %1068 = vmatprep.subr.bf16.mxu0 %v1176_v56 }
  0x32   :  { %1090 = vmatprep.subr.bf16.mxu1 %v1177_v57 }
  0x34   :  { %1069 = vmatpush3.bf16.msra.mxu0 %v1178_v58 }
  0x35   :  { %1091 = vmatpush3.bf16.msra.mxu1 %v1179_v59  ;;  %1070 = vmatprep.subr.bf16.mxu0 %v1180_v60 }
  0x36   :  { %1092 = vmatprep.subr.bf16.mxu1 %v1181_v61 }
  0x38   :  { %1071 = vmatpush3.bf16.msra.mxu0 %v1182_v62 }
  0x39   :  { %1093 = vmatpush3.bf16.msra.mxu1 %v1183_v63  ;;  %1072 = vmatprep.subr.bf16.mxu0 %v1184_v0 }
  0x3a   :  { %1094 = vmatprep.subr.bf16.mxu1 %v1185_v1 }
  0x3c   :  { %1073 = vmatpush3.bf16.msra.mxu0 %v1186_v2 }
  0x3d   :  { %1095 = vmatpush3.bf16.msra.mxu1 %v1187_v3  ;;  %1074 = vmatprep.subr.bf16.mxu0 %v1188_v4 }
  0x3e   :  { %1096 = vmatprep.subr.bf16.mxu1 %v1189_v5 }
  0x40   :  { %1075 = vmatpush3.bf16.msra.mxu0 %v1190_v6 }
  0x41   :  { %11 = vsyncpa [#allocation3], 0  ;;  %1097 = vmatpush3.bf16.msra.mxu1 %v1191_v7  ;;  %v945_v14 = vcombine.low %v28_v12, %v32_v13  ;;  %v946_v15 = vcombine.high %v28_v12, %v32_v13  ;;  %699 = vmatprep.mubr.bf16.mxu0 %v944_v11  ;;  %v1011_v43 = vld [vmem:[%s1525_s3] ss:$0 sm:$0xff]  ;;  %vm757_vm0 = vcmask 80896   ;;  %v1226_v50 = vmov 0  }
  0x42   :  { %v771_v49 = vld [vmem:[%s1526_s4] sm:$0xff]  ;;  %1126 = vset.pattern.permute.xlu1 %v1226_v50  ;;  %1127 = vset.pattern.permute.xlu0 %v1226_v50  ;;  %v780_v57 = vld [vmem:[%s1523_s1 + $0x8] sm:$0x3]  ;;  %vm784_vm1 = vcmask 1041408   ;;  %v1227_v58 = vmov 0.0|0.0   ;;  %vm1228_vm2 = vmmov 1   ;;  %v769_v0 = vlaneseq }
  0x43   :  { %740 = vmatprep.mubr.bf16.mxu1 %v946_v15  ;;  %700 = vmatmul.mubr.bf16.vlgmr.msra.gmra.mrb[4].mxu0 %v943_v10  ;;  %v779_v56 = vld [vmem:[%s1523_s1] sm:$0xff]  ;;  %vm1116_vm3 = vmpackc.low %vm784_vm1, %vm1228_vm2  ;;  %vm1229_vm4 = vmmov 0   ;;  %v1230_v60 = vmov 0.0   ;;  %vm911_vm9 = vcmask 7168   ;;  %s1231_s1 = smov [#allocation2]   ;;  %vm923_vm10 = vcmask 0  }
  0x44   :  { %741 = vmatmul.mubr.bf16.vlgmr.msra.gmra.mrb[4].mxu1 %v945_v14  ;;  %773 = vperm.xlu1 %1126, %v771_v49   ;;  %v1115_v59 = vpack.c.bf16 %v780_v57, %v779_v56  ;;  %v880_v61 = vld [vmem:[%s1527_s5] sm:$0xff]  ;;  %v770_v1 = vand.u32 127, %v769_v0  ;;  %s931_s5 = sshll.u32 %s1231_s1, 4  ;;  %s932_s5 = int_to_ptr.vmem [resolvable:$true] %s931_s5 }
  0x45   :  { %1114 = vmatprep.subr.bf16.mxu0 %v1227_v58  ;;  %1111 = vmatprep.mubr.msk.f32.mxu0 %vm1229_vm4, %v1230_v60  ;;  %v881_v62 = vsel %vm757_vm0, %v880_v61, -inf  ;;  %s1202_s28 = scalar_lea.vmem %s932_s5, 16  ;;  %s1206_s29 = scalar_lea.vmem %s932_s5, 32 }
  0x46   :  { %1117 = vmatpush3.bf16.msk.msra.mxu0 %vm1116_vm3, %v1115_v59  ;;  %p1203_p0 = scmp.ne.s32.totalorder %s932_s5, %s1202_s28  ;;  %p1207_p1 = scmp.lt.s32.totalorder %s932_s5, %s932_s5 }
  0x47   :  { %p1208_p2 = scmp.lt.s32.totalorder %s1206_s29, %s1202_s28 }
  0x49   :  { %p1209_p3 = por %p1208_p2, %p1207_p1 }
  0x4b   :  { %p1210_p4 = pnand %p1209_p3, %p1203_p0 }
  0x68   :  { %882 = vmax.xlane.f32.xlu1 %v881_v62 }
  0xc3   :  { %v774_v2 = vpop.permute.xlu1 %773 }
  0xc4   :  { %vm775_vm5 = vcmp.eq.s32.totalorder %v770_v1, %v774_v2 }
  0xc5   :  { %v1012_v4 = vsel %vm775_vm5, 1.0, %v1230_v60 }
  0xf5   :  { %v883_v9 = vpop.xlane.xlu1 %882 }
  0xf6   :  { %v1032_v16 = vpop.f32.mrb[0].mxu0  ;;  %v884_v10 = vsub.f32 %v880_v61, %v883_v9 }
  0xf7   :  { %v1054_v17 = vpop.f32.mrb[0].mxu1  ;;  %v1033_v18 = vpop.f32.mrb[1].mxu0 }
  0xf8   :  { %v1034_v19 = vadd.f32 %v1033_v18, %v1032_v16  ;;  %v1055_v20 = vpop.f32.mrb[1].mxu1  ;;  %v1035_v21 = vpop.f32.mrb[2].mxu0  ;;  %v885_v11 = vmul.f32 1.442695, %v884_v10 }
  0xf9   :  { %v1056_v22 = vadd.f32 %v1055_v20, %v1054_v17  ;;  %v1057_v23 = vpop.f32.mrb[2].mxu1  ;;  %v1036_v24 = vpop.f32.mrb[3].mxu0  ;;  %v893_v20 = vmul.f32 %v1012_v4, %v880_v61 }
  0xfa   :  { %v1037_v25 = vadd.f32 %v1036_v24, %v1035_v21  ;;  %v1058_v26 = vpop.f32.mrb[3].mxu1 }
  0xfb   :  { %v661_v27 = vadd.f32 %v1056_v22, %v1034_v19  ;;  %v1059_v28 = vadd.f32 %v1058_v26, %v1057_v23  ;;  %v894_v21 = vsel %vm757_vm0, %v893_v20, 0.0 }
  0xfd   :  { %v664_v29 = vadd.f32 %v1059_v28, %v1037_v25 }
 0x116   :  { %v1076_v30 = vpop.f32.mrb[4].mxu0 }
 0x117   :  { %v1098_v31 = vpop.f32.mrb[4].mxu1  ;;  %v1077_v32 = vpop.f32.mrb[5].mxu0 }
 0x118   :  { %v1078_v33 = vadd.f32 %v1077_v32, %v1076_v30  ;;  %v1099_v34 = vpop.f32.mrb[5].mxu1  ;;  %v1079_v35 = vpop.f32.mrb[6].mxu0 }
 0x119   :  { %v1100_v36 = vadd.f32 %v1099_v34, %v1098_v31  ;;  %v1101_v37 = vpop.f32.mrb[6].mxu1  ;;  %v1080_v38 = vpop.f32.mrb[7].mxu0  ;;  %v900_v31 = vshrl.u32 %v769_v0, 7 }
 0x11a   :  { %v702_v39 = vadd.f32 %v1078_v33, %v661_v27  ;;  %v1081_v40 = vadd.f32 %v1080_v38, %v1079_v35  ;;  %v1102_v41 = vpop.f32.mrb[7].mxu1 }
 0x11b   :  { %v1103_v42 = vadd.f32 %v1102_v41, %v1101_v37  ;;  %vm903_vm8 = vcmp.lt.s32.totalorder %v900_v31, 2 }
 0x11c   :  { %v743_v44 = vadd.f32 %v1100_v36, %v702_v39  ;;  %v705_v45 = vadd.f32 %v1081_v40, %v664_v29 }
 0x11e   :  { %v746_v46 = vadd.f32 %v1103_v42, %v705_v45  ;;  %v756_v47 = vadd.f32 %v1011_v43, %v743_v44  ;;  %v1015_v43 = vsel %vm903_vm8, 1.0, %v1230_v60 }
 0x120   :  { %v758_v48 = vsel %vm757_vm0, %v756_v47, -inf }
 0x121   :  { %759 = vmax.xlane.f32.xlu0 %v758_v48 }
 0x1ae   :  { %v760_v51 = vpop.xlane.xlu0 %759 }
 0x1af   :  { %v761_v52 = vsub.f32 %v756_v47, %v760_v51 }
 0x1b1   :  { %v762_v53 = vmul.f32 1.442695, %v761_v52 }
 0x1b3   :  { %1192 = vpow2.f32 %v762_v53 }
 0x1bd   :  { %v1193_v54 = vpop.eup %1192 }
 0x1be   :  { %v764_v55 = vsel %vm757_vm0, %v1193_v54, 0.0 }
 0x1bf   :  { %765 = vadd.xlane.f32.xlu0 %v764_v55 }
 0x24c   :  { %v766_v63 = vpop.xlane.xlu0 %765 }
 0x24d   :  { %1194 = vrcp.f32 %v766_v63 }
 0x24e   :  { %1196 = vpow2.f32 %v885_v11 }
 0x257   :  { %v1195_v3 = vpop.eup %1194 }
 0x258   :  { %v768_v5 = vmul.f32 %v1195_v3, %v1193_v54  ;;  %v1197_v15 = vpop.eup %1196 }
 0x259   :  { %v887_v17 = vsel %vm757_vm0, %v1197_v15, 0.0 }
 0x25a   :  { %v778_v6 = vsub.f32 %v1012_v4, %v768_v5  ;;  %v870_v7 = vmul.f32 %v768_v5, %v746_v46 }
 0x25c   :  { %1112 = vmatmul.mubr.msk.f32.vlgmr.msra.gmra.mrb[8].mxu0 %vm757_vm0, %v778_v6  ;;  %v874_v8 = vmul.f32 %v870_v7, %v746_v46  ;;  %v871_v18 = vsel %vm757_vm0, %v870_v7, 0.0 }
 0x25e   :  { %v875_v19 = vsel %vm757_vm0, %v874_v8, 0.0 }
 0x32f   :  { %v854_v12 = vpop.f32.mrb[8].mxu0 }
 0x330   :  { %v858_v13 = vmul.f32 %v854_v12, %v778_v6  ;;  %v1113_v14 = vpop.f32.mrb[9].mxu0 }
 0x332   :  { %v859_v16 = vsel %vm757_vm0, %v858_v13, 0.0 }
 0x333   :  { %860 = vadd.xlane.f32.xlu0 %v859_v16 }
 0x337   :  { %888 = vadd.xlane.f32.xlu0 %v887_v17 }
 0x33b   :  { %872 = vadd.xlane.f32.xlu0 %v871_v18 }
 0x33f   :  { %876 = vadd.xlane.f32.xlu0 %v875_v19 }
 0x343   :  { %895 = vadd.xlane.f32.xlu0 %v894_v21 }
 0x3c0   :  { %v861_v22 = vpop.xlane.xlu0 %860 }
 0x3c1   :  { %v862_v23 = vmax.f32 %v861_v22, 0.0 }
 0x3c3   :  { %1198 = vrsqrt.f32 %v862_v23  ;;  %vm865_vm6 = vcmp.eq.f32.partialorder %v862_v23, inf  ;;  %v868_v33 = vand.u32 2147483648, %v862_v23  ;;  %vm867_vm7 = vcmp.eq.f32.partialorder %v862_v23, 0.0 }
 0x3c4   :  { %v889_v24 = vpop.xlane.xlu0 %888 }
 0x3c5   :  { %1200 = vlog2.f32 %v889_v24 }
 0x3c8   :  { %v873_v25 = vpop.xlane.xlu0 %872 }
 0x3c9   :  { %v878_v26 = vmul.f32 %v873_v25, %v873_v25 }
 0x3cc   :  { %v877_v27 = vpop.xlane.xlu0 %876 }
 0x3cd   :  { %v1199_v28 = vpop.eup %1198  ;;  %v879_v29 = vsub.f32 %v878_v26, %v877_v27 }
 0x3ce   :  { %v864_v30 = vmul.f32 %v1199_v28, %v862_v23 }
 0x3cf   :  { %v1201_v32 = vpop.eup %1200  ;;  %v906_v34 = vmul.f32 2.0, %v879_v29 }
 0x3d0   :  { %v891_v35 = vmul.f32 0.6931472, %v1201_v32  ;;  %v866_v36 = vsel %vm865_vm6, %v862_v23, %v864_v30  ;;  %v896_v40 = vpop.xlane.xlu0 %895 }
 0x3d1   :  { %v869_v37 = vsel %vm867_vm7, %v868_v33, %v866_v36 }
 0x3d2   :  { %v907_v38 = vadd.f32 %v906_v34, %v869_v37  ;;  %v892_v39 = vadd.f32 %v891_v35, %v883_v9 }
 0x3d4   :  { %v908_v41 = vmul.f32 6.0, %v907_v38  ;;  %v897_v42 = vsub.f32 %v892_v39, %v896_v40 }
 0x3d6   :  { %v909_v44 = vadd.f32 %v908_v41, %v897_v42 }
 0x3d8   :  { %v910_v45 = vmul.f32 %v1015_v43, %v909_v44 }
 0x3da   :  { %v912_v46 = vsel %vm911_vm9, %v910_v45, 0.0 }
 0x3db   :  { %913 = vadd.xlane.f32.xlu0 %v912_v46 }
 0x468   :  { %v914_v47 = vpop.xlane.xlu0 %913 }
 0x469   :  { %v915_v48 = vrot.slane %v914_v47, 4 }
 0x46b   :  { %v916_v49 = vadd.f32 %v915_v48, %v914_v47 }
 0x46d   :  { %v917_v50 = vrot.slane %v916_v49, 2 }
 0x46f   :  { %v918_v51 = vadd.f32 %v917_v50, %v916_v49 }
 0x471   :  { %v919_v52 = vrot.slane %v918_v51, 1 }
 0x473   :  { %v920_v53 = vadd.f32 %v919_v52, %v918_v51 }
 0x475   :  { %1118 = vpush %v920_v53 }
 0x4a6   :  { %s1119_s27 = spop %1118 }
 0x4a7   :  { %v922_v54 = vstv %s1119_s27 }
 0x4a8   :  { %924 = vst.msk [vmem:[#allocation2] sm:$0x1] %vm923_vm10, %v922_v54 }
 0x4a9   :  { %1213 = shalt.err (!%p1210_p4)
}
 0x4aa   :  { %s1214_s8 = scalar_lea.hbm %s1528_s6, 16 }
 0x4ab   :  { %p1215_p5 = scmp.ne.s32.totalorder %s1528_s6, %s1214_s8  ;;  %p1218_p6 = scmp.lt.u32.totalorder %s1214_s8, %s1528_s6 }
 0x4ad   :  { %p1220_p7 = pnand %p1218_p6, %p1215_p5 }
 0x4af   :  { %1223 = shalt.err (!%p1220_p7)
}
 0x4b0   :  { %934 = dma.vmem_to_hbm [thread:$0]  %s932_s5, 16, %s1528_s6, [#allocation3]  }
 0x4b1   :  { %1224 = dma.done.wait [#allocation3], 16  }
 0x4b2   :  { %1225 = vsyncadd [#allocation3], 4294967280 }
 0x4b3   :  { %938 = vsyncpa [#allocation3], 1 }

</bundles_post_ra>
